<compile_context>
chip_gen: v7x
topology: tpu7x:2x2x1
jax: 0.10.0
libtpu: 0.0.40
codegen_flags: <defaults>
</compile_context>

<pallas_src>
import functools

import jax
import jax.numpy as jnp
from jax.experimental import pallas as pl
from jax.experimental.pallas import tpu as pltpu


def _label_smoothing_kernel(x_ref, tgt_ref, out_ref, *,
                            padding_idx, confidence, base):
    x = x_ref[...].astype(jnp.float32)            # (Tn, V)
    tgt = tgt_ref[...]                            # (Tn, 1) int32

    # log-sum-exp over the vocab (lane) axis.
    m = jnp.max(x, axis=-1, keepdims=True)                           # (Tn, 1)
    se = jnp.sum(jnp.exp(x - m), axis=-1, keepdims=True)             # (Tn, 1)
    lse = jnp.log(se) + m                                            # (Tn, 1)

    # Build true_dist inline (base everywhere, confidence at target column,
    # zero at padding column) and take one weighted lane reduce.
    cols = jax.lax.broadcasted_iota(jnp.int32, x.shape, 1)
    td = jnp.where(cols == padding_idx, 0.0,
                   jnp.where(cols == tgt, confidence, base))         # (Tn, V)
    dot = jnp.sum(td * x, axis=-1, keepdims=True)                    # (Tn, 1)

    # Rows whose target == padding_idx are dropped in the torch code; for the
    # kept rows sum(td) == 1, so row_loss = lse - dot.
    valid = (tgt != padding_idx).astype(jnp.float32)                 # (Tn, 1)
    row_loss = (lse - dot) * valid                                   # (Tn, 1)

    # One partial per row block, broadcast over a lane-dense (8,128) tile so
    # the store is a full unmasked vst; the wrapper reads element [0, 0].
    partial = jnp.sum(row_loss)
    out_ref[...] = jnp.full(out_ref.shape, partial, dtype=out_ref.dtype)


def _pick_row_tile(n_rows, vocab, itemsize):
    """Largest row tile whose double-buffered x block fits the VMEM budget."""
    try:
        vmem_cap = int(pltpu.get_tpu_info().vmem_capacity_bytes)
    except Exception:
        vmem_cap = 64 << 20            # conservative: v7x per-TensorCore VMEM
    budget = min(vmem_cap // 3, 40 << 20)      # budget for double-buffered x
    rt = budget // (2 * vocab * itemsize)
    rt = max(8, min(1024, int(rt) // 8 * 8))
    # no point tiling past the (8-padded) row count
    rt = min(rt, max(8, ((n_rows + 7) // 8) * 8))
    return rt


def label_smoothing_loss(x, target, *, size, padding_idx, smoothing,
                         row_tile=None):
    """x: (N, size) float (f32 or bf16), target: (N,) int. Returns scalar f32."""
    N, V = x.shape
    assert V == size
    confidence = 1.0 - smoothing
    base = smoothing / (size - 2)
    itemsize = jnp.dtype(x.dtype).itemsize

    if row_tile is None:
        row_tile = _pick_row_tile(N, V, itemsize)
    assert row_tile % 8 == 0

    num_blocks = -(-N // row_tile)
    n_pad = num_blocks * row_tile
    if n_pad != N:
        # Padded rows get target == padding_idx -> exactly zero contribution.
        x = jnp.pad(x, ((0, n_pad - N), (0, 0)))
        target = jnp.pad(target, (0, n_pad - N), constant_values=padding_idx)
    tgt2d = target.astype(jnp.int32).reshape(n_pad, 1)

    kernel = functools.partial(
        _label_smoothing_kernel,
        padding_idx=padding_idx, confidence=confidence, base=base)

    # double-buffered x block + lane-padded target block + output tiles + slack
    est = 2 * row_tile * V * itemsize + 2 * row_tile * 512 + 2 * 8 * 128 * 4
    vmem_limit = int(min(max(est + (16 << 20), 32 << 20), 60 << 20))

    partials = pl.pallas_call(
        kernel,
        out_shape=jax.ShapeDtypeStruct((num_blocks, 8, 128), jnp.float32),
        grid_spec=pltpu.PrefetchScalarGridSpec(
            num_scalar_prefetch=0,
            grid=(num_blocks,),
            in_specs=[
                pl.BlockSpec((row_tile, V), lambda i: (i, 0)),
                pl.BlockSpec((row_tile, 1), lambda i: (i, 0)),
            ],
            out_specs=pl.BlockSpec((1, 8, 128), lambda i: (i, 0, 0)),
        ),
        compiler_params=pltpu.CompilerParams(
            dimension_semantics=("parallel",),
            vmem_limit_bytes=vmem_limit),
    )(x, tgt2d)

    # TODO(synk): for vocab < 128 the lane axis is underfilled (e.g. V=32 uses
    # 32/128 lanes); lane-packing multiple rows per vreg is not implemented.
    return jnp.sum(partials[:, 0, 0])


def _reference(x, target, *, size, padding_idx, smoothing):
    confidence = 1.0 - smoothing
    base = smoothing / (size - 2)
    N, V = x.shape
    cols = jnp.arange(V)[None, :]
    td = jnp.full((N, V), base, dtype=jnp.float32)
    td = jnp.where(cols == target[:, None], confidence, td)
    td = jnp.where(cols == padding_idx, 0.0, td)
    valid = (target != padding_idx).astype(jnp.float32)[:, None]
    td = td * valid
    logsm = jax.nn.log_softmax(x.astype(jnp.float32), axis=1)
    return -jnp.sum(td * logsm)


if __name__ == "__main__":
    key = jax.random.PRNGKey(0)
    k1x, k1t, k2x, k2t = jax.random.split(key, 4)

    # Config 1: matches the module's toy setup (vocab 32, padding_idx 0).
    size, padding_idx, smoothing, N = 32, 0, 0.1, 16
    x = jax.random.normal(k1x, (N, size), dtype=jnp.float32)
    target = jax.random.randint(k1t, (N,), 0, size, dtype=jnp.int32)
    target = target.at[3].set(padding_idx).at[9].set(padding_idx)

    loss = jax.block_until_ready(label_smoothing_loss(
        x, target, size=size, padding_idx=padding_idx, smoothing=smoothing))
    ref = _reference(x, target, size=size, padding_idx=padding_idx,
                     smoothing=smoothing)
    assert jnp.allclose(loss, ref, rtol=1e-5, atol=1e-4), (loss, ref)

    # Config 2: non-multiple-of-tile row count + multiple parallel blocks
    # (exercises the padding path and per-block partial outputs).
    size2, pad2, sm2, N2 = 160, 1, 0.2, 37
    x2 = jax.random.normal(k2x, (N2, size2), dtype=jnp.float32)
    t2 = jax.random.randint(k2t, (N2,), 0, size2, dtype=jnp.int32)
    t2 = t2.at[5].set(pad2).at[20].set(pad2)
    loss2 = jax.block_until_ready(label_smoothing_loss(
        x2, t2, size=size2, padding_idx=pad2, smoothing=sm2, row_tile=16))
    ref2 = _reference(x2, t2, size=size2, padding_idx=pad2, smoothing=sm2)
    assert jnp.allclose(loss2, ref2, rtol=1e-5, atol=1e-4), (loss2, ref2)

    print("KERNEL_OK")
</pallas_src>

<mosaic_0001>
module attributes {stable_mosaic.version = 11 : i64} {
  func.func @_label_smoothing_kernel(%arg0: i32, %arg1: memref<16x32xf32, #tpu.memory_space<vmem>>, %arg2: memref<16x1xi32, #tpu.memory_space<vmem>>, %arg3: memref<1x8x128xf32, #tpu.memory_space<vmem>>) attributes {dimension_semantics = [#tpu.dimension_semantics<parallel>], iteration_bounds = array<i64: 1>, scalar_prefetch = 0 : i64, scratch_operands = 0 : i64, tpu.core_type = #tpu.core_type<tc>, window_params = [{transform_indices = @transform_0, window_bounds = array<i64: 16, 32>}, {transform_indices = @transform_1, window_bounds = array<i64: 16, 1>}, {transform_indices = @transform_2, window_bounds = array<i64: 1, 8, 128>}]} {
    %c0 = arith.constant 0 : index
    %c0_0 = arith.constant 0 : index
    %0 = vector.load %arg1[%c0, %c0_0] : memref<16x32xf32, #tpu.memory_space<vmem>>, vector<16x32xf32>
    %c0_1 = arith.constant 0 : index
    %c0_2 = arith.constant 0 : index
    %1 = vector.load %arg2[%c0_1, %c0_2] : memref<16x1xi32, #tpu.memory_space<vmem>>, vector<16x1xi32>
    %cst = arith.constant dense<0xFF800000> : vector<16xf32>
    %2 = vector.multi_reduction <maximumf>, %0, %cst [1] : vector<16x32xf32> to vector<16xf32>
    %3 = vector.shape_cast %2 : vector<16xf32> to vector<16x1xf32>
    %4 = vector.broadcast %3 : vector<16x1xf32> to vector<16x32xf32>
    %5 = arith.subf %0, %4 : vector<16x32xf32>
    %6 = math.exp %5 : vector<16x32xf32>
    %cst_3 = arith.constant dense<0.000000e+00> : vector<16xf32>
    %7 = vector.multi_reduction <add>, %6, %cst_3 [1] : vector<16x32xf32> to vector<16xf32>
    %8 = vector.shape_cast %7 : vector<16xf32> to vector<16x1xf32>
    %9 = math.log %8 : vector<16x1xf32>
    %10 = arith.addf %9, %3 : vector<16x1xf32>
    %11 = tpu.iota {dimensions = array<i32: 1>} : vector<16x32xi32>
    %c0_i32 = arith.constant 0 : i32
    %12 = vector.broadcast %c0_i32 : i32 to vector<16x32xi32>
    %13 = arith.cmpi eq, %11, %12 : vector<16x32xi32>
    %14 = vector.broadcast %1 : vector<16x1xi32> to vector<16x32xi32>
    %15 = arith.cmpi eq, %11, %14 : vector<16x32xi32>
    %cst_4 = arith.constant 0.899999976 : f32
    %cst_5 = arith.constant 0.00333333341 : f32
    %16 = vector.broadcast %cst_4 : f32 to vector<16x32xf32>
    %17 = vector.broadcast %cst_5 : f32 to vector<16x32xf32>
    %18 = arith.select %15, %16, %17 : vector<16x32xi1>, vector<16x32xf32>
    %cst_6 = arith.constant 0.000000e+00 : f32
    %19 = vector.broadcast %cst_6 : f32 to vector<16x32xf32>
    %20 = arith.select %13, %19, %18 : vector<16x32xi1>, vector<16x32xf32>
    %21 = arith.mulf %20, %0 : vector<16x32xf32>
    %cst_7 = arith.constant dense<0.000000e+00> : vector<16xf32>
    %22 = vector.multi_reduction <add>, %21, %cst_7 [1] : vector<16x32xf32> to vector<16xf32>
    %23 = vector.shape_cast %22 : vector<16xf32> to vector<16x1xf32>
    %c0_i32_8 = arith.constant 0 : i32
    %24 = vector.broadcast %c0_i32_8 : i32 to vector<16x1xi32>
    %25 = arith.cmpi ne, %1, %24 : vector<16x1xi32>
    %26 = arith.extui %25 : vector<16x1xi1> to vector<16x1xi32>
    %27 = arith.sitofp %26 : vector<16x1xi32> to vector<16x1xf32>
    %28 = arith.subf %10, %23 : vector<16x1xf32>
    %29 = arith.mulf %28, %27 : vector<16x1xf32>
    %30 = vector.shape_cast %29 : vector<16x1xf32> to vector<1x16x1xf32>
    %cst_9 = arith.constant dense<0.000000e+00> : vector<1xf32>
    %31 = vector.multi_reduction <add>, %30, %cst_9 [1, 2] : vector<1x16x1xf32> to vector<1xf32>
    %32 = vector.shape_cast %31 : vector<1xf32> to vector<1x1x1xf32>
    %33 = vector.extract %32[0, 0, 0] : f32 from vector<1x1x1xf32>
    %34 = vector.broadcast %33 : f32 to vector<1x8x128xf32>
    %c0_10 = arith.constant 0 : index
    %c0_11 = arith.constant 0 : index
    %c0_12 = arith.constant 0 : index
    %35 = vector.load %arg3[%c0_10, %c0_11, %c0_12] : memref<1x8x128xf32, #tpu.memory_space<vmem>>, vector<1x8x128xf32>
    tpu.vector_store %arg3[%c0_10, %c0_11, %c0_12], %34 {strides = array<i32>} : memref<1x8x128xf32, #tpu.memory_space<vmem>>, vector<1x8x128xf32>,
    return
  }
  func.func @transform_0(%arg0: i32) -> (i32, i32) {
    %c0_i32 = arith.constant 0 : i32
    %c0_i32_0 = arith.constant 0 : i32
    return %arg0, %c0_i32 : i32, i32
  }
  func.func @transform_1(%arg0: i32) -> (i32, i32) {
    %c0_i32 = arith.constant 0 : i32
    %c0_i32_0 = arith.constant 0 : i32
    return %arg0, %c0_i32 : i32, i32
  }
  func.func @transform_2(%arg0: i32) -> (i32, i32, i32) {
    %c0_i32 = arith.constant 0 : i32
    %c0_i32_0 = arith.constant 0 : i32
    %c0_i32_1 = arith.constant 0 : i32
    return %arg0, %c0_i32, %c0_i32_0 : i32, i32, i32
  }
}

</mosaic_0001>

<bundles_post_ra>
// kernel: tpu_custom_call.1
= control target key start
LH: loop header
LB: loop body
LE: loop exit
PB: predicated region body
PF: predicated region fallthrough
CT: control target
= control target key end

     0   :  { %vm16_vm0 = vcmask 261120   ;;  %v145_v4 = vmov 0   ;;  %s194_s0 = inlined_call_operand.vmem [shape: f32[16,32], index: 0, kind: input, shape index: {}]   ;;  %s195_s1 = inlined_call_operand.vmem [shape: s32[16,1], index: 1, kind: input, shape index: {}]   ;;  %s196_s2 = inlined_call_operand.hbm [shape: f32[1,8,128], index: 2, kind: output, shape index: {}]  }
   0x1   :  { %v12_v0 = vld [vmem:[%s194_s0] sm:$0xff]  ;;  %v13_v1 = vld [vmem:[%s194_s0 + $0x8] sm:$0xff]  ;;  %111 = vset.pattern.permute.xlu1 %v145_v4  ;;  %112 = vset.pattern.permute.xlu0 %v145_v4 }
   0x2   :  { %v14_v2 = vld [vmem:[%s195_s1] sm:$0xff]  ;;  %v17_v3 = vsel %vm16_vm0, %v12_v0, -inf }
   0x3   :  { %7 = vsyncpa [#allocation3], 0  ;;  %18 = vmax.xlane.f32.xlu0 %v17_v3  ;;  %45 = vperm.xlu1 %111, %v14_v2   ;;  %v20_v5 = vsel %vm16_vm0, %v13_v1, -inf  ;;  %v15_v6 = vld [vmem:[%s195_s1 + $0x8] sm:$0xff]  ;;  %v41_v7 = vlaneseq  ;;  %v146_v17 = vmov 0.0033333334  }
   0x4   :  { %vm64_vm4 = vcmp.ne.s32.totalorder %v14_v2, 0  ;;  %vm65_vm5 = vcmp.ne.s32.totalorder %v15_v6, 0  ;;  %v147_v39 = vmov 0.0   ;;  %vm74_vm6 = vcmask 7168   ;;  %s148_s0 = smov [#allocation2]  }
   0x5   :  { %v42_v11 = vand.u32 127, %v41_v7  ;;  %v103_v40 = vsel %vm64_vm4, 1.0, %v147_v39  ;;  %v104_v42 = vsel %vm65_vm5, 1.0, %v147_v39  ;;  %s95_s1 = sshll.u32 %s148_s0, 4  ;;  %s96_s1 = int_to_ptr.vmem [resolvable:$true] %s95_s1 }
   0x6   :  { %s121_s18 = scalar_lea.vmem %s96_s1, 128  ;;  %p126_p1 = scmp.lt.s32.totalorder %s96_s1, %s96_s1 }
   0x7   :  { %21 = vmax.xlane.f32.xlu0 %v20_v5  ;;  %48 = vperm.xlu1 %111, %v15_v6   ;;  %vm43_vm2 = vcmp.eq.s32.totalorder %v42_v11, 0  ;;  %p122_p0 = scmp.ne.s32.totalorder %s96_s1, %s121_s18  ;;  %p127_p2 = scmp.lt.s32.totalorder %s121_s18, %s121_s18 }
   0x9   :  { %p128_p3 = por %p127_p2, %p126_p1 }
   0xb   :  { %p129_p4 = pnand %p128_p3, %p122_p0 }
  0x82   :  { %v46_v9 = vpop.permute.xlu1 %45 }
  0x83   :  { %vm50_vm1 = vcmp.eq.s32.totalorder %v42_v11, %v46_v9 }
  0x84   :  { %v52_v18 = vsel %vm50_vm1, 0.9, %v146_v17 }
  0x85   :  { %v54_v19 = vsel %vm43_vm2, 0.0, %v52_v18 }
  0x86   :  { %v49_v15 = vpop.permute.xlu1 %48  ;;  %v56_v21 = vmul.f32 %v54_v19, %v12_v0 }
  0x87   :  { %vm51_vm3 = vcmp.eq.s32.totalorder %v42_v11, %v49_v15 }
  0x88   :  { %v53_v20 = vsel %vm51_vm3, 0.9, %v146_v17  ;;  %v58_v25 = vsel %vm16_vm0, %v56_v21, 0.0 }
  0x89   :  { %v55_v23 = vsel %vm43_vm2, 0.0, %v53_v20 }
  0x8a   :  { %v57_v26 = vmul.f32 %v55_v23, %v13_v1 }
  0x8c   :  { %v61_v29 = vsel %vm16_vm0, %v57_v26, 0.0 }
  0x90   :  { %v19_v8 = vpop.xlane.xlu0 %18 }
  0x91   :  { %v23_v10 = vsub.f32 %v12_v0, %v19_v8 }
  0x93   :  { %v25_v12 = vmul.f32 1.442695, %v23_v10 }
  0x94   :  { %v22_v13 = vpop.xlane.xlu0 %21 }
  0x95   :  { %113 = vpow2.f32 %v25_v12  ;;  %v24_v14 = vsub.f32 %v13_v1, %v22_v13 }
  0x97   :  { %v27_v16 = vmul.f32 1.442695, %v24_v14 }
  0x99   :  { %115 = vpow2.f32 %v27_v16 }
  0x9f   :  { %v114_v22 = vpop.eup %113 }
  0xa0   :  { %v29_v24 = vsel %vm16_vm0, %v114_v22, 0.0 }
  0xa1   :  { %30 = vadd.xlane.f32.xlu0 %v29_v24 }
  0xa3   :  { %v116_v27 = vpop.eup %115 }
  0xa4   :  { %v32_v28 = vsel %vm16_vm0, %v116_v27, 0.0 }
  0xa5   :  { %33 = vadd.xlane.f32.xlu1 %v32_v28  ;;  %59 = vadd.xlane.f32.xlu0 %v58_v25 }
  0xa9   :  { %62 = vadd.xlane.f32.xlu0 %v61_v29 }
 0x12e   :  { %v31_v30 = vpop.xlane.xlu0 %30 }
 0x12f   :  { %117 = vlog2.f32 %v31_v30 }
 0x132   :  { %v34_v31 = vpop.xlane.xlu1 %33  ;;  %v60_v34 = vpop.xlane.xlu0 %59 }
 0x133   :  { %119 = vlog2.f32 %v34_v31 }
 0x136   :  { %v63_v43 = vpop.xlane.xlu0 %62 }
 0x139   :  { %v118_v32 = vpop.eup %117 }
 0x13a   :  { %v36_v33 = vmul.f32 0.6931472, %v118_v32 }
 0x13c   :  { %v39_v35 = vadd.f32 %v36_v33, %v19_v8 }
 0x13d   :  { %v120_v36 = vpop.eup %119 }
 0x13e   :  { %v38_v37 = vmul.f32 0.6931472, %v120_v36  ;;  %v70_v38 = vsub.f32 %v39_v35, %v60_v34 }
 0x140   :  { %v40_v41 = vadd.f32 %v38_v37, %v22_v13  ;;  %v72_v44 = vmul.f32 %v103_v40, %v70_v38 }
 0x142   :  { %v71_v45 = vsub.f32 %v40_v41, %v63_v43  ;;  %v75_v47 = vsel %vm74_vm6, %v72_v44, 0.0 }
 0x144   :  { %v73_v46 = vmul.f32 %v104_v42, %v71_v45 }
 0x146   :  { %v76_v48 = vsel %vm74_vm6, %v73_v46, 0.0 }
 0x147   :  { %v77_v49 = vadd.f32 %v76_v48, %v75_v47 }
 0x149   :  { %78 = vadd.xlane.f32.xlu0 %v77_v49 }
 0x1d6   :  { %v79_v50 = vpop.xlane.xlu0 %78 }
 0x1d7   :  { %v80_v51 = vrot.slane %v79_v50, 4 }
 0x1d9   :  { %v81_v52 = vadd.f32 %v80_v51, %v79_v50 }
 0x1db   :  { %v82_v53 = vrot.slane %v81_v52, 2 }
 0x1dd   :  { %v83_v54 = vadd.f32 %v82_v53, %v81_v52 }
 0x1df   :  { %v84_v55 = vrot.slane %v83_v54, 1 }
 0x1e1   :  { %v85_v56 = vadd.f32 %v84_v55, %v83_v54 }
 0x1e3   :  { %105 = vpush %v85_v56 }
 0x214   :  { %s106_s17 = spop %105 }
 0x215   :  { %v87_v57 = vstv %s106_s17 }
 0x216   :  { %88 = vst [vmem:[#allocation2] sm:$0xff] %v87_v57 }
 0x217   :  { %132 = shalt.err (!%p129_p4)
}
 0x218   :  { %s133_s21 = scalar_lea.hbm %s196_s2, 128 }
 0x219   :  { %p134_p5 = scmp.ne.s32.totalorder %s196_s2, %s133_s21  ;;  %p137_p6 = scmp.lt.u32.totalorder %s133_s21, %s196_s2 }
 0x21b   :  { %p139_p7 = pnand %p137_p6, %p134_p5 }
 0x21d   :  { %142 = shalt.err (!%p139_p7)
}
 0x21e   :  { %98 = dma.vmem_to_hbm [thread:$0]  %s96_s1, 128, %s196_s2, [#allocation3]  }
 0x21f   :  { %143 = dma.done.wait [#allocation3], 128  }
 0x220   :  { %144 = vsyncadd [#allocation3], 4294967168 }
 0x221   :  { %102 = vsyncpa [#allocation3], 1 }

</bundles_post_ra>
